<compile_context>
chip_gen: v7x
topology: tpu7x:2x2x1
jax: 0.10.0
libtpu: 0.0.40
codegen_flags: <defaults>
</compile_context>

<pallas_src>
import jax
import jax.numpy as jnp
from jax.experimental import pallas as pl
from jax.experimental.pallas import tpu as pltpu

# ------------------------- model hyper-parameters ---------------------------
B = 2            # train_batch_size
CIN = 3          # image channels
H = W = 16       # image spatial
POOL_SIZE = 8    # config['loss']['pool_size'] (feature-map resolution)
K_MASKS = 3      # number of mask regions
CFEAT = 16       # encoder feature channels
HIDDEN = 32      # projection / predictor hidden size
PROJ = 16        # projection output dim
MM = 0.996       # momentum for the target-network update

TWOB = 2 * B                    # samples per branch (both views concatenated)
P = POOL_SIZE * POOL_SIZE       # feature-map locations (8x8)
KPAD = 32                       # 3*3*CIN = 27 padded to a multiple of 8
NPAD = 128                      # lane-dense padded projection/prediction width
ROWS = TWOB * K_MASKS           # 12 pooled (sample, mask) rows
ROWS_PAD = 16                   # padded to a sublane multiple

ENC_LEAVES = ('conv_w', 'conv_b', 'proj_w1', 'proj_b1', 'proj_w2', 'proj_b2')


# =============================== Pallas kernel ===============================

def _byol_step_kernel(
        mm_ref, onehot_ref, patches_ref,
        o_cw_ref, o_cb_ref, o_pw1_ref, o_pb1_ref, o_pw2_ref, o_pb2_ref,
        t_cw_ref, t_cb_ref, t_pw1_ref, t_pb1_ref, t_pw2_ref, t_pb2_ref,
        mk_w_ref, mk_b_ref,
        pr_w1_ref, pr_b1_ref, pr_w2_ref, pr_b2_ref,
        q_ref, tz_ref,
        n_cw_ref, n_cb_ref, n_pw1_ref, n_pb1_ref, n_pw2_ref, n_pb2_ref):
    """Whole BYOL step: EMA target update + online/target encoders + predictor."""
    mm = mm_ref[...]                       # (1, 1) -> broadcasts against leaves
    om = 1.0 - mm

    # ---- momentum update of the target network (f32, before target forward) --
    new_cw = mm * t_cw_ref[...] + om * o_cw_ref[...]
    new_cb = mm * t_cb_ref[...] + om * o_cb_ref[...]
    new_pw1 = mm * t_pw1_ref[...] + om * o_pw1_ref[...]
    new_pb1 = mm * t_pb1_ref[...] + om * o_pb1_ref[...]
    new_pw2 = mm * t_pw2_ref[...] + om * o_pw2_ref[...]
    new_pb2 = mm * t_pb2_ref[...] + om * o_pb2_ref[...]
    n_cw_ref[...] = new_cw
    n_cb_ref[...] = new_cb
    n_pw1_ref[...] = new_pw1
    n_pb1_ref[...] = new_pb1
    n_pw2_ref[...] = new_pw2
    n_pb2_ref[...] = new_pb2

    onehot = onehot_ref[...]                          # (ROWS_PAD, 2B*P) f32
    patches = patches_ref[...]                        # (KPAD, 2B*P)     f32
    mkw = mk_w_ref[...].astype(jnp.bfloat16)          # (ROWS_PAD, CFEAT)
    mkb = mk_b_ref[...]                               # (ROWS_PAD, 1)

    def branch(pat, cw, cb, pw1, pb1, pw2, pb2):
        # 3x3/s2 conv as channels-major im2col matmul (+bias, ReLU); bf16 MXU.
        feat = jnp.dot(cw.astype(jnp.bfloat16), pat.astype(jnp.bfloat16),
                       preferred_element_type=jnp.float32)
        feat = jnp.maximum(feat + cb, 0.0)                        # (CFEAT, 2B*P)
        # Masknet 1x1 conv -> one sigmoid gate per (sample, mask) slot
        # (weights pre-replicated so a single matmul produces all slots).
        gate = jax.nn.sigmoid(
            jnp.dot(mkw, feat.astype(jnp.bfloat16),
                    preferred_element_type=jnp.float32) + mkb)    # (ROWS_PAD, 2B*P)
        # Vectorized binary-mask pooling: block-diagonal one-hot * gates,
        # one f32 contraction over locations + one lane reduce + exact divide.
        wgt = onehot * gate                                       # (ROWS_PAD, 2B*P)
        num = jax.lax.dot_general(
            wgt, feat, (((1,), (1,)), ((), ())),
            preferred_element_type=jnp.float32)                   # (ROWS_PAD, CFEAT)
        den = jnp.sum(wgt, axis=1, keepdims=True)                 # (ROWS_PAD, 1)
        pooled = num / (den + 1e-6)
        # Projection MLP (rows = padded (sample, mask) slots).
        h = jnp.maximum(
            jnp.dot(pooled.astype(jnp.bfloat16), pw1.astype(jnp.bfloat16),
                    preferred_element_type=jnp.float32) + pb1, 0.0)
        return jnp.dot(h.astype(jnp.bfloat16), pw2.astype(jnp.bfloat16),
                       preferred_element_type=jnp.float32) + pb2  # (ROWS_PAD, NPAD)

    # ---- online branch: cat([view1, view2]); predictor fused on top ---------
    z_on = branch(patches, o_cw_ref[...], o_cb_ref[...], o_pw1_ref[...],
                  o_pb1_ref[...], o_pw2_ref[...], o_pb2_ref[...])
    hq = jnp.maximum(
        jnp.dot(z_on.astype(jnp.bfloat16), pr_w1_ref[...].astype(jnp.bfloat16),
                preferred_element_type=jnp.float32) + pr_b1_ref[...], 0.0)
    q_ref[...] = jnp.dot(hq.astype(jnp.bfloat16),
                         pr_w2_ref[...].astype(jnp.bfloat16),
                         preferred_element_type=jnp.float32) + pr_b2_ref[...]

    # ---- target branch: cat([view2, view1]) == batch halves swapped ---------
    # Single patches slab; swap is a lane roll (shift = B*P = 128 lanes). The
    # un-swapped mask one-hot is reused, exactly as the reference forward does.
    pat_t = pltpu.roll(patches, shift=B * P, axis=1)
    tz_ref[...] = branch(pat_t, new_cw, new_cb, new_pw1, new_pb1,
                         new_pw2, new_pb2)


def byol_step(mm_arr, onehot_t, patches_t, online, target, masknet, predictor):
    """Single fused pallas_call; whole-array VMEM blocks (everything is tiny)."""
    enc_out = [jax.ShapeDtypeStruct(target[k].shape, target[k].dtype)
               for k in ENC_LEAVES]
    out_shape = tuple(
        [jax.ShapeDtypeStruct((ROWS_PAD, NPAD), jnp.float32),   # q   (padded)
         jax.ShapeDtypeStruct((ROWS_PAD, NPAD), jnp.float32)]   # t_z (padded)
        + enc_out)                                               # new target
    outs = pl.pallas_call(
        _byol_step_kernel,
        out_shape=out_shape,
        # Old target leaves (inputs 9..14) are updated in place (outputs 2..7).
        input_output_aliases={9: 2, 10: 3, 11: 4, 12: 5, 13: 6, 14: 7},
    )(mm_arr, onehot_t, patches_t,
      *[online[k] for k in ENC_LEAVES],
      *[target[k] for k in ENC_LEAVES],
      masknet['w'], masknet['b'],
      predictor['w1'], predictor['b1'], predictor['w2'], predictor['b2'])
    q_pad, tz_pad = outs[0], outs[1]
    new_target = dict(zip(ENC_LEAVES, outs[2:]))
    return q_pad, tz_pad, new_target


# ================================ JAX glue ===================================

def convert_binary_mask(masks_2b, pool_size):
    """(2B, 1, H, W) float region-id map -> (2B, P) int32 ids at pooled res."""
    twob, _, h, _ = masks_2b.shape
    stride = h // pool_size
    ids = masks_2b[:, 0, ::stride, ::stride]          # nearest downsample
    return ids.reshape(twob, pool_size * pool_size).astype(jnp.int32)


def build_onehot_t(ids):
    """Block-diagonal (sample, mask) one-hot, transposed: (ROWS_PAD, 2B*P)."""
    oh = jax.nn.one_hot(ids, K_MASKS, dtype=jnp.float32)          # (2B, P, K)
    eye = jnp.eye(TWOB, dtype=jnp.float32)
    bd = (oh[:, :, None, :] * eye[:, None, :, None])              # (2B,P,2B,K)
    bd = bd.reshape(TWOB * P, ROWS)
    bd = jnp.pad(bd, ((0, 0), (0, ROWS_PAD - ROWS)))              # pad 12 -> 16
    return bd.T                                                   # (16, 2B*P)


def build_patches_t(x_nchw):
    """im2col (3x3, stride 2, pad 1), transposed to (KPAD, 2B*P)."""
    # TODO(synk): fold the 3x3 window gather into the Pallas kernel for real
    #             image sizes; at 16x16 the wrapper-side im2col is negligible.
    x = jnp.transpose(x_nchw, (0, 2, 3, 1))                       # NCHW -> NHWC
    xp = jnp.pad(x, ((0, 0), (1, 1), (1, 1), (0, 0)))
    lim = 2 * (POOL_SIZE - 1) + 1
    cols = [xp[:, i:i + lim:2, j:j + lim:2, :]
            for i in range(3) for j in range(3)]
    patches = jnp.stack(cols, axis=3).reshape(TWOB * P, 9 * CIN)  # (2B*P, 27)
    patches = jnp.pad(patches, ((0, 0), (0, KPAD - 9 * CIN)))
    return patches.T.astype(jnp.float32)                          # (KPAD, 2B*P)


def init_params(key):
    """All params are created directly in kernel-ready (padded) layout once."""
    ks = jax.random.split(key, 6)
    s = 0.1
    conv = jax.random.normal(ks[0], (3 * 3 * CIN, CFEAT), jnp.float32) * s
    encoder = {
        # channels-major conv weights, im2col dim padded 27 -> 32 with zeros
        'conv_w': jnp.pad(conv.T, ((0, 0), (0, KPAD - 3 * 3 * CIN))),
        'conv_b': jnp.zeros((CFEAT, 1), jnp.float32),
        'proj_w1': jax.random.normal(ks[1], (CFEAT, HIDDEN), jnp.float32) * s,
        'proj_b1': jnp.zeros((1, HIDDEN), jnp.float32),
        # projection output padded PROJ -> 128 (zero cols -> lane-dense stores;
        # the zero padding is preserved exactly by the in-kernel EMA).
        'proj_w2': jnp.pad(
            jax.random.normal(ks[2], (HIDDEN, PROJ), jnp.float32) * s,
            ((0, 0), (0, NPAD - PROJ))),
        'proj_b2': jnp.zeros((1, NPAD), jnp.float32),
    }
    # _initializes_target_network: target starts as an exact copy of online.
    target = jax.tree_util.tree_map(jnp.array, encoder)

    # Masknet 1x1 conv, pre-replicated to one gate row per (sample, mask) slot
    # (rows 12..15 are zero padding slots) so the kernel needs no in-kernel tile.
    mask_w = jax.random.normal(ks[3], (CFEAT, K_MASKS), jnp.float32) * s
    masknet = {
        'w': jnp.pad(jnp.tile(mask_w.T, (TWOB, 1)),
                     ((0, ROWS_PAD - ROWS), (0, 0))),             # (16, CFEAT)
        'b': jnp.zeros((ROWS_PAD, 1), jnp.float32),
    }
    predictor = {
        'w1': jnp.pad(jax.random.normal(ks[4], (PROJ, HIDDEN), jnp.float32) * s,
                      ((0, NPAD - PROJ), (0, 0))),
        'b1': jnp.zeros((1, HIDDEN), jnp.float32),
        'w2': jnp.pad(jax.random.normal(ks[5], (HIDDEN, PROJ), jnp.float32) * s,
                      ((0, 0), (0, NPAD - PROJ))),
        'b2': jnp.zeros((1, NPAD), jnp.float32),
    }
    return {'online': encoder, 'target': target,
            'masknet': masknet, 'predictor': predictor}


def byol_forward(params, view1, view2, mm, masks):
    """Mirrors BYOLModel.forward (wandb_id=None path).

    Returns ((q, target_z, pinds, tinds), new_target_params).
    """
    # masks: (B, 2, 1, H, W) -> cat over the view axis along batch -> (2B,1,H,W)
    m = jnp.concatenate([masks[:, i] for i in range(masks.shape[1])], axis=0)
    ids = convert_binary_mask(m, POOL_SIZE)                       # (2B, P)
    onehot_t = build_onehot_t(ids)                                # (16, 2B*P)

    x_online = jnp.concatenate([view1, view2], axis=0)            # (2B,CIN,H,W)
    patches_t = build_patches_t(x_online)                         # (KPAD, 2B*P)

    mm_arr = jnp.full((1, 1), mm, jnp.float32)

    q_pad, tz_pad, new_target = byol_step(
        mm_arr, onehot_t, patches_t, params['online'], params['target'],
        params['masknet'], params['predictor'])

    q = q_pad[:ROWS, :PROJ]
    target_z = jax.lax.stop_gradient(tz_pad[:ROWS, :PROJ])        # .detach().clone()
    inds = jnp.tile(jnp.arange(K_MASKS, dtype=jnp.int32), TWOB)
    return (q, target_z, inds, inds), new_target


# ================================== main =====================================

if __name__ == "__main__":
    key = jax.random.PRNGKey(0)
    kv1, kv2, km, kp = jax.random.split(key, 4)

    view1 = jax.random.normal(kv1, (B, CIN, H, W), jnp.float32)
    view2 = jax.random.normal(kv2, (B, CIN, H, W), jnp.float32)
    # masks carry integer region ids in [0, K_MASKS) per pixel, per view.
    masks = jax.random.randint(km, (B, 2, 1, H, W), 0, K_MASKS).astype(jnp.float32)

    params = init_params(kp)
    fwd = jax.jit(byol_forward)
    (q, target_z, pinds, tinds), new_target = fwd(params, view1, view2, MM, masks)
    jax.block_until_ready((q, target_z, pinds, tinds, new_target))

    assert q.shape == (ROWS, PROJ)
    assert target_z.shape == (ROWS, PROJ)
    assert pinds.shape == (ROWS,) and tinds.shape == (ROWS,)
    assert new_target['conv_w'].shape == (CFEAT, KPAD)
    assert bool(jnp.all(jnp.isfinite(q))) and bool(jnp.all(jnp.isfinite(target_z)))
    print("KERNEL_OK")
</pallas_src>

<mosaic_0001>
module attributes {stable_mosaic.version = 11 : i64} {
  func.func @_byol_step_kernel(%arg0: memref<1x1xf32, #tpu.memory_space<vmem>>, %arg1: memref<16x256xf32, #tpu.memory_space<vmem>>, %arg2: memref<32x256xf32, #tpu.memory_space<vmem>>, %arg3: memref<16x32xf32, #tpu.memory_space<vmem>>, %arg4: memref<16x1xf32, #tpu.memory_space<vmem>>, %arg5: memref<16x32xf32, #tpu.memory_space<vmem>>, %arg6: memref<1x32xf32, #tpu.memory_space<vmem>>, %arg7: memref<32x128xf32, #tpu.memory_space<vmem>>, %arg8: memref<1x128xf32, #tpu.memory_space<vmem>>, %arg9: memref<16x32xf32, #tpu.memory_space<vmem>>, %arg10: memref<16x1xf32, #tpu.memory_space<vmem>>, %arg11: memref<16x32xf32, #tpu.memory_space<vmem>>, %arg12: memref<1x32xf32, #tpu.memory_space<vmem>>, %arg13: memref<32x128xf32, #tpu.memory_space<vmem>>, %arg14: memref<1x128xf32, #tpu.memory_space<vmem>>, %arg15: memref<16x16xf32, #tpu.memory_space<vmem>>, %arg16: memref<16x1xf32, #tpu.memory_space<vmem>>, %arg17: memref<128x32xf32, #tpu.memory_space<vmem>>, %arg18: memref<1x32xf32, #tpu.memory_space<vmem>>, %arg19: memref<32x128xf32, #tpu.memory_space<vmem>>, %arg20: memref<1x128xf32, #tpu.memory_space<vmem>>, %arg21: memref<16x128xf32, #tpu.memory_space<vmem>>, %arg22: memref<16x128xf32, #tpu.memory_space<vmem>>, %arg23: memref<16x32xf32, #tpu.memory_space<vmem>>, %arg24: memref<16x1xf32, #tpu.memory_space<vmem>>, %arg25: memref<16x32xf32, #tpu.memory_space<vmem>>, %arg26: memref<1x32xf32, #tpu.memory_space<vmem>>, %arg27: memref<32x128xf32, #tpu.memory_space<vmem>>, %arg28: memref<1x128xf32, #tpu.memory_space<vmem>>) attributes {dimension_semantics = [], scalar_prefetch = 0 : i64, scratch_operands = 0 : i64, tpu.core_type = #tpu.core_type<tc>} {
    %c0 = arith.constant 0 : index
    %c0_0 = arith.constant 0 : index
    %0 = vector.load %arg0[%c0, %c0_0] : memref<1x1xf32, #tpu.memory_space<vmem>>, vector<1x1xf32>
    %cst = arith.constant 1.000000e+00 : f32
    %1 = vector.broadcast %cst : f32 to vector<1x1xf32>
    %2 = arith.subf %1, %0 : vector<1x1xf32>
    %c0_1 = arith.constant 0 : index
    %c0_2 = arith.constant 0 : index
    %3 = vector.load %arg9[%c0_1, %c0_2] : memref<16x32xf32, #tpu.memory_space<vmem>>, vector<16x32xf32>
    %4 = vector.broadcast %0 : vector<1x1xf32> to vector<16x32xf32>
    %5 = arith.mulf %4, %3 : vector<16x32xf32>
    %c0_3 = arith.constant 0 : index
    %c0_4 = arith.constant 0 : index
    %6 = vector.load %arg3[%c0_3, %c0_4] : memref<16x32xf32, #tpu.memory_space<vmem>>, vector<16x32xf32>
    %7 = vector.broadcast %2 : vector<1x1xf32> to vector<16x32xf32>
    %8 = arith.mulf %7, %6 : vector<16x32xf32>
    %9 = arith.addf %5, %8 : vector<16x32xf32>
    %c0_5 = arith.constant 0 : index
    %c0_6 = arith.constant 0 : index
    %10 = vector.load %arg10[%c0_5, %c0_6] : memref<16x1xf32, #tpu.memory_space<vmem>>, vector<16x1xf32>
    %11 = vector.broadcast %0 : vector<1x1xf32> to vector<16x1xf32>
    %12 = arith.mulf %11, %10 : vector<16x1xf32>
    %c0_7 = arith.constant 0 : index
    %c0_8 = arith.constant 0 : index
    %13 = vector.load %arg4[%c0_7, %c0_8] : memref<16x1xf32, #tpu.memory_space<vmem>>, vector<16x1xf32>
    %14 = vector.broadcast %2 : vector<1x1xf32> to vector<16x1xf32>
    %15 = arith.mulf %14, %13 : vector<16x1xf32>
    %16 = arith.addf %12, %15 : vector<16x1xf32>
    %c0_9 = arith.constant 0 : index
    %c0_10 = arith.constant 0 : index
    %17 = vector.load %arg11[%c0_9, %c0_10] : memref<16x32xf32, #tpu.memory_space<vmem>>, vector<16x32xf32>
    %18 = vector.broadcast %0 : vector<1x1xf32> to vector<16x32xf32>
    %19 = arith.mulf %18, %17 : vector<16x32xf32>
    %c0_11 = arith.constant 0 : index
    %c0_12 = arith.constant 0 : index
    %20 = vector.load %arg5[%c0_11, %c0_12] : memref<16x32xf32, #tpu.memory_space<vmem>>, vector<16x32xf32>
    %21 = vector.broadcast %2 : vector<1x1xf32> to vector<16x32xf32>
    %22 = arith.mulf %21, %20 : vector<16x32xf32>
    %23 = arith.addf %19, %22 : vector<16x32xf32>
    %c0_13 = arith.constant 0 : index
    %c0_14 = arith.constant 0 : index
    %24 = vector.load %arg12[%c0_13, %c0_14] : memref<1x32xf32, #tpu.memory_space<vmem>>, vector<1x32xf32>
    %25 = vector.broadcast %0 : vector<1x1xf32> to vector<1x32xf32>
    %26 = arith.mulf %25, %24 : vector<1x32xf32>
    %c0_15 = arith.constant 0 : index
    %c0_16 = arith.constant 0 : index
    %27 = vector.load %arg6[%c0_15, %c0_16] : memref<1x32xf32, #tpu.memory_space<vmem>>, vector<1x32xf32>
    %28 = vector.broadcast %2 : vector<1x1xf32> to vector<1x32xf32>
    %29 = arith.mulf %28, %27 : vector<1x32xf32>
    %30 = arith.addf %26, %29 : vector<1x32xf32>
    %c0_17 = arith.constant 0 : index
    %c0_18 = arith.constant 0 : index
    %31 = vector.load %arg13[%c0_17, %c0_18] : memref<32x128xf32, #tpu.memory_space<vmem>>, vector<32x128xf32>
    %32 = vector.broadcast %0 : vector<1x1xf32> to vector<32x128xf32>
    %33 = arith.mulf %32, %31 : vector<32x128xf32>
    %c0_19 = arith.constant 0 : index
    %c0_20 = arith.constant 0 : index
    %34 = vector.load %arg7[%c0_19, %c0_20] : memref<32x128xf32, #tpu.memory_space<vmem>>, vector<32x128xf32>
    %35 = vector.broadcast %2 : vector<1x1xf32> to vector<32x128xf32>
    %36 = arith.mulf %35, %34 : vector<32x128xf32>
    %37 = arith.addf %33, %36 : vector<32x128xf32>
    %c0_21 = arith.constant 0 : index
    %c0_22 = arith.constant 0 : index
    %38 = vector.load %arg14[%c0_21, %c0_22] : memref<1x128xf32, #tpu.memory_space<vmem>>, vector<1x128xf32>
    %39 = vector.broadcast %0 : vector<1x1xf32> to vector<1x128xf32>
    %40 = arith.mulf %39, %38 : vector<1x128xf32>
    %c0_23 = arith.constant 0 : index
    %c0_24 = arith.constant 0 : index
    %41 = vector.load %arg8[%c0_23, %c0_24] : memref<1x128xf32, #tpu.memory_space<vmem>>, vector<1x128xf32>
    %42 = vector.broadcast %2 : vector<1x1xf32> to vector<1x128xf32>
    %43 = arith.mulf %42, %41 : vector<1x128xf32>
    %44 = arith.addf %40, %43 : vector<1x128xf32>
    %c0_25 = arith.constant 0 : index
    %c0_26 = arith.constant 0 : index
    %45 = vector.load %arg23[%c0_25, %c0_26] : memref<16x32xf32, #tpu.memory_space<vmem>>, vector<16x32xf32>
    tpu.vector_store %arg23[%c0_25, %c0_26], %9 {strides = array<i32>} : memref<16x32xf32, #tpu.memory_space<vmem>>, vector<16x32xf32>,
    %c0_27 = arith.constant 0 : index
    %c0_28 = arith.constant 0 : index
    %46 = vector.load %arg24[%c0_27, %c0_28] : memref<16x1xf32, #tpu.memory_space<vmem>>, vector<16x1xf32>
    tpu.vector_store %arg24[%c0_27, %c0_28], %16 {strides = array<i32>} : memref<16x1xf32, #tpu.memory_space<vmem>>, vector<16x1xf32>,
    %c0_29 = arith.constant 0 : index
    %c0_30 = arith.constant 0 : index
    %47 = vector.load %arg25[%c0_29, %c0_30] : memref<16x32xf32, #tpu.memory_space<vmem>>, vector<16x32xf32>
    tpu.vector_store %arg25[%c0_29, %c0_30], %23 {strides = array<i32>} : memref<16x32xf32, #tpu.memory_space<vmem>>, vector<16x32xf32>,
    %c0_31 = arith.constant 0 : index
    %c0_32 = arith.constant 0 : index
    %48 = vector.load %arg26[%c0_31, %c0_32] : memref<1x32xf32, #tpu.memory_space<vmem>>, vector<1x32xf32>
    tpu.vector_store %arg26[%c0_31, %c0_32], %30 {strides = array<i32>} : memref<1x32xf32, #tpu.memory_space<vmem>>, vector<1x32xf32>,
    %c0_33 = arith.constant 0 : index
    %c0_34 = arith.constant 0 : index
    %49 = vector.load %arg27[%c0_33, %c0_34] : memref<32x128xf32, #tpu.memory_space<vmem>>, vector<32x128xf32>
    tpu.vector_store %arg27[%c0_33, %c0_34], %37 {strides = array<i32>} : memref<32x128xf32, #tpu.memory_space<vmem>>, vector<32x128xf32>,
    %c0_35 = arith.constant 0 : index
    %c0_36 = arith.constant 0 : index
    %50 = vector.load %arg28[%c0_35, %c0_36] : memref<1x128xf32, #tpu.memory_space<vmem>>, vector<1x128xf32>
    tpu.vector_store %arg28[%c0_35, %c0_36], %44 {strides = array<i32>} : memref<1x128xf32, #tpu.memory_space<vmem>>, vector<1x128xf32>,
    %c0_37 = arith.constant 0 : index
    %c0_38 = arith.constant 0 : index
    %51 = vector.load %arg1[%c0_37, %c0_38] : memref<16x256xf32, #tpu.memory_space<vmem>>, vector<16x256xf32>
    %c0_39 = arith.constant 0 : index
    %c0_40 = arith.constant 0 : index
    %52 = vector.load %arg2[%c0_39, %c0_40] : memref<32x256xf32, #tpu.memory_space<vmem>>, vector<32x256xf32>
    %c0_41 = arith.constant 0 : index
    %c0_42 = arith.constant 0 : index
    %53 = vector.load %arg15[%c0_41, %c0_42] : memref<16x16xf32, #tpu.memory_space<vmem>>, vector<16x16xf32>
    %54 = arith.truncf %53 : vector<16x16xf32> to vector<16x16xbf16>
    %c0_43 = arith.constant 0 : index
    %c0_44 = arith.constant 0 : index
    %55 = vector.load %arg16[%c0_43, %c0_44] : memref<16x1xf32, #tpu.memory_space<vmem>>, vector<16x1xf32>
    %c0_45 = arith.constant 0 : index
    %c0_46 = arith.constant 0 : index
    %56 = vector.load %arg3[%c0_45, %c0_46] : memref<16x32xf32, #tpu.memory_space<vmem>>, vector<16x32xf32>
    %c0_47 = arith.constant 0 : index
    %c0_48 = arith.constant 0 : index
    %57 = vector.load %arg4[%c0_47, %c0_48] : memref<16x1xf32, #tpu.memory_space<vmem>>, vector<16x1xf32>
    %c0_49 = arith.constant 0 : index
    %c0_50 = arith.constant 0 : index
    %58 = vector.load %arg5[%c0_49, %c0_50] : memref<16x32xf32, #tpu.memory_space<vmem>>, vector<16x32xf32>
    %c0_51 = arith.constant 0 : index
    %c0_52 = arith.constant 0 : index
    %59 = vector.load %arg6[%c0_51, %c0_52] : memref<1x32xf32, #tpu.memory_space<vmem>>, vector<1x32xf32>
    %c0_53 = arith.constant 0 : index
    %c0_54 = arith.constant 0 : index
    %60 = vector.load %arg7[%c0_53, %c0_54] : memref<32x128xf32, #tpu.memory_space<vmem>>, vector<32x128xf32>
    %c0_55 = arith.constant 0 : index
    %c0_56 = arith.constant 0 : index
    %61 = vector.load %arg8[%c0_55, %c0_56] : memref<1x128xf32, #tpu.memory_space<vmem>>, vector<1x128xf32>
    %62 = arith.truncf %56 : vector<16x32xf32> to vector<16x32xbf16>
    %63 = arith.truncf %52 : vector<32x256xf32> to vector<32x256xbf16>
    %cst_57 = arith.constant dense<0.000000e+00> : vector<16x256xf32>
    %64 = tpu.matmul %62, %63, %cst_57 {dimension_numbers = #tpu.dot_dimension_numbers<[1], [0], [0], [1], [0, 0, 1, 1], [], []>} : vector<16x32xbf16>, vector<32x256xbf16>, vector<16x256xf32> -> vector<16x256xf32>
    %65 = vector.broadcast %57 : vector<16x1xf32> to vector<16x256xf32>
    %66 = arith.addf %64, %65 : vector<16x256xf32>
    %cst_58 = arith.constant 0.000000e+00 : f32
    %67 = vector.broadcast %cst_58 : f32 to vector<16x256xf32>
    %68 = arith.maximumf %66, %67 : vector<16x256xf32>
    %69 = arith.truncf %68 : vector<16x256xf32> to vector<16x256xbf16>
    %cst_59 = arith.constant dense<0.000000e+00> : vector<16x256xf32>
    %70 = tpu.matmul %54, %69, %cst_59 {dimension_numbers = #tpu.dot_dimension_numbers<[1], [0], [0], [1], [0, 0, 1, 1], [], []>} : vector<16x16xbf16>, vector<16x256xbf16>, vector<16x256xf32> -> vector<16x256xf32>
    %71 = vector.broadcast %55 : vector<16x1xf32> to vector<16x256xf32>
    %72 = arith.addf %70, %71 : vector<16x256xf32>
    %73 = arith.negf %72 : vector<16x256xf32>
    %74 = math.exp %73 : vector<16x256xf32>
    %cst_60 = arith.constant 1.000000e+00 : f32
    %75 = vector.broadcast %cst_60 : f32 to vector<16x256xf32>
    %76 = arith.addf %75, %74 : vector<16x256xf32>
    %77 = arith.divf %75, %76 : vector<16x256xf32>
    %78 = arith.mulf %51, %77 : vector<16x256xf32>
    %cst_61 = arith.constant dense<0.000000e+00> : vector<16x16xf32>
    %79 = tpu.matmul %78, %68, %cst_61 {dimension_numbers = #tpu.dot_dimension_numbers<[1], [1], [0], [0], [0, 0, 1, 0], [], []>} : vector<16x256xf32>, vector<16x256xf32>, vector<16x16xf32> -> vector<16x16xf32>
    %cst_62 = arith.constant dense<0.000000e+00> : vector<16xf32>
    %80 = vector.multi_reduction <add>, %78, %cst_62 [1] : vector<16x256xf32> to vector<16xf32>
    %81 = vector.shape_cast %80 : vector<16xf32> to vector<16x1xf32>
    %cst_63 = arith.constant 9.99999997E-7 : f32
    %82 = vector.broadcast %cst_63 : f32 to vector<16x1xf32>
    %83 = arith.addf %81, %82 : vector<16x1xf32>
    %84 = vector.broadcast %83 : vector<16x1xf32> to vector<16x16xf32>
    %85 = arith.divf %79, %84 : vector<16x16xf32>
    %86 = arith.truncf %85 : vector<16x16xf32> to vector<16x16xbf16>
    %87 = arith.truncf %58 : vector<16x32xf32> to vector<16x32xbf16>
    %cst_64 = arith.constant dense<0.000000e+00> : vector<16x32xf32>
    %88 = tpu.matmul %86, %87, %cst_64 {dimension_numbers = #tpu.dot_dimension_numbers<[1], [0], [0], [1], [0, 0, 1, 1], [], []>} : vector<16x16xbf16>, vector<16x32xbf16>, vector<16x32xf32> -> vector<16x32xf32>
    %89 = vector.broadcast %59 : vector<1x32xf32> to vector<16x32xf32>
    %90 = arith.addf %88, %89 : vector<16x32xf32>
    %cst_65 = arith.constant 0.000000e+00 : f32
    %91 = vector.broadcast %cst_65 : f32 to vector<16x32xf32>
    %92 = arith.maximumf %90, %91 : vector<16x32xf32>
    %93 = arith.truncf %92 : vector<16x32xf32> to vector<16x32xbf16>
    %94 = arith.truncf %60 : vector<32x128xf32> to vector<32x128xbf16>
    %cst_66 = arith.constant dense<0.000000e+00> : vector<16x128xf32>
    %95 = tpu.matmul %93, %94, %cst_66 {dimension_numbers = #tpu.dot_dimension_numbers<[1], [0], [0], [1], [0, 0, 1, 1], [], []>} : vector<16x32xbf16>, vector<32x128xbf16>, vector<16x128xf32> -> vector<16x128xf32>
    %96 = vector.broadcast %61 : vector<1x128xf32> to vector<16x128xf32>
    %97 = arith.addf %95, %96 : vector<16x128xf32>
    %98 = arith.truncf %97 : vector<16x128xf32> to vector<16x128xbf16>
    %c0_67 = arith.constant 0 : index
    %c0_68 = arith.constant 0 : index
    %99 = vector.load %arg17[%c0_67, %c0_68] : memref<128x32xf32, #tpu.memory_space<vmem>>, vector<128x32xf32>
    %100 = arith.truncf %99 : vector<128x32xf32> to vector<128x32xbf16>
    %cst_69 = arith.constant dense<0.000000e+00> : vector<16x32xf32>
    %101 = tpu.matmul %98, %100, %cst_69 {dimension_numbers = #tpu.dot_dimension_numbers<[1], [0], [0], [1], [0, 0, 1, 1], [], []>} : vector<16x128xbf16>, vector<128x32xbf16>, vector<16x32xf32> -> vector<16x32xf32>
    %c0_70 = arith.constant 0 : index
    %c0_71 = arith.constant 0 : index
    %102 = vector.load %arg18[%c0_70, %c0_71] : memref<1x32xf32, #tpu.memory_space<vmem>>, vector<1x32xf32>
    %103 = vector.broadcast %102 : vector<1x32xf32> to vector<16x32xf32>
    %104 = arith.addf %101, %103 : vector<16x32xf32>
    %cst_72 = arith.constant 0.000000e+00 : f32
    %105 = vector.broadcast %cst_72 : f32 to vector<16x32xf32>
    %106 = arith.maximumf %104, %105 : vector<16x32xf32>
    %107 = arith.truncf %106 : vector<16x32xf32> to vector<16x32xbf16>
    %c0_73 = arith.constant 0 : index
    %c0_74 = arith.constant 0 : index
    %108 = vector.load %arg19[%c0_73, %c0_74] : memref<32x128xf32, #tpu.memory_space<vmem>>, vector<32x128xf32>
    %109 = arith.truncf %108 : vector<32x128xf32> to vector<32x128xbf16>
    %cst_75 = arith.constant dense<0.000000e+00> : vector<16x128xf32>
    %110 = tpu.matmul %107, %109, %cst_75 {dimension_numbers = #tpu.dot_dimension_numbers<[1], [0], [0], [1], [0, 0, 1, 1], [], []>} : vector<16x32xbf16>, vector<32x128xbf16>, vector<16x128xf32> -> vector<16x128xf32>
    %c0_76 = arith.constant 0 : index
    %c0_77 = arith.constant 0 : index
    %111 = vector.load %arg20[%c0_76, %c0_77] : memref<1x128xf32, #tpu.memory_space<vmem>>, vector<1x128xf32>
    %112 = vector.broadcast %111 : vector<1x128xf32> to vector<16x128xf32>
    %113 = arith.addf %110, %112 : vector<16x128xf32>
    %c0_78 = arith.constant 0 : index
    %c0_79 = arith.constant 0 : index
    %114 = vector.load %arg21[%c0_78, %c0_79] : memref<16x128xf32, #tpu.memory_space<vmem>>, vector<16x128xf32>
    tpu.vector_store %arg21[%c0_78, %c0_79], %113 {strides = array<i32>} : memref<16x128xf32, #tpu.memory_space<vmem>>, vector<16x128xf32>,
    %c128_i32 = arith.constant 128 : i32
    %115 = tpu.dynamic_rotate %52 by %c128_i32 dim 1 : vector<32x256xf32>, i32 -> vector<32x256xf32>
    %116 = arith.truncf %9 : vector<16x32xf32> to vector<16x32xbf16>
    %117 = arith.truncf %115 : vector<32x256xf32> to vector<32x256xbf16>
    %cst_80 = arith.constant dense<0.000000e+00> : vector<16x256xf32>
    %118 = tpu.matmul %116, %117, %cst_80 {dimension_numbers = #tpu.dot_dimension_numbers<[1], [0], [0], [1], [0, 0, 1, 1], [], []>} : vector<16x32xbf16>, vector<32x256xbf16>, vector<16x256xf32> -> vector<16x256xf32>
    %119 = vector.broadcast %16 : vector<16x1xf32> to vector<16x256xf32>
    %120 = arith.addf %118, %119 : vector<16x256xf32>
    %cst_81 = arith.constant 0.000000e+00 : f32
    %121 = vector.broadcast %cst_81 : f32 to vector<16x256xf32>
    %122 = arith.maximumf %120, %121 : vector<16x256xf32>
    %123 = arith.truncf %122 : vector<16x256xf32> to vector<16x256xbf16>
    %cst_82 = arith.constant dense<0.000000e+00> : vector<16x256xf32>
    %124 = tpu.matmul %54, %123, %cst_82 {dimension_numbers = #tpu.dot_dimension_numbers<[1], [0], [0], [1], [0, 0, 1, 1], [], []>} : vector<16x16xbf16>, vector<16x256xbf16>, vector<16x256xf32> -> vector<16x256xf32>
    %125 = vector.broadcast %55 : vector<16x1xf32> to vector<16x256xf32>
    %126 = arith.addf %124, %125 : vector<16x256xf32>
    %127 = arith.negf %126 : vector<16x256xf32>
    %128 = math.exp %127 : vector<16x256xf32>
    %cst_83 = arith.constant 1.000000e+00 : f32
    %129 = vector.broadcast %cst_83 : f32 to vector<16x256xf32>
    %130 = arith.addf %129, %128 : vector<16x256xf32>
    %131 = arith.divf %129, %130 : vector<16x256xf32>
    %132 = arith.mulf %51, %131 : vector<16x256xf32>
    %cst_84 = arith.constant dense<0.000000e+00> : vector<16x16xf32>
    %133 = tpu.matmul %132, %122, %cst_84 {dimension_numbers = #tpu.dot_dimension_numbers<[1], [1], [0], [0], [0, 0, 1, 0], [], []>} : vector<16x256xf32>, vector<16x256xf32>, vector<16x16xf32> -> vector<16x16xf32>
    %cst_85 = arith.constant dense<0.000000e+00> : vector<16xf32>
    %134 = vector.multi_reduction <add>, %132, %cst_85 [1] : vector<16x256xf32> to vector<16xf32>
    %135 = vector.shape_cast %134 : vector<16xf32> to vector<16x1xf32>
    %cst_86 = arith.constant 9.99999997E-7 : f32
    %136 = vector.broadcast %cst_86 : f32 to vector<16x1xf32>
    %137 = arith.addf %135, %136 : vector<16x1xf32>
    %138 = vector.broadcast %137 : vector<16x1xf32> to vector<16x16xf32>
    %139 = arith.divf %133, %138 : vector<16x16xf32>
    %140 = arith.truncf %139 : vector<16x16xf32> to vector<16x16xbf16>
    %141 = arith.truncf %23 : vector<16x32xf32> to vector<16x32xbf16>
    %cst_87 = arith.constant dense<0.000000e+00> : vector<16x32xf32>
    %142 = tpu.matmul %140, %141, %cst_87 {dimension_numbers = #tpu.dot_dimension_numbers<[1], [0], [0], [1], [0, 0, 1, 1], [], []>} : vector<16x16xbf16>, vector<16x32xbf16>, vector<16x32xf32> -> vector<16x32xf32>
    %143 = vector.broadcast %30 : vector<1x32xf32> to vector<16x32xf32>
    %144 = arith.addf %142, %143 : vector<16x32xf32>
    %cst_88 = arith.constant 0.000000e+00 : f32
    %145 = vector.broadcast %cst_88 : f32 to vector<16x32xf32>
    %146 = arith.maximumf %144, %145 : vector<16x32xf32>
    %147 = arith.truncf %146 : vector<16x32xf32> to vector<16x32xbf16>
    %148 = arith.truncf %37 : vector<32x128xf32> to vector<32x128xbf16>
    %cst_89 = arith.constant dense<0.000000e+00> : vector<16x128xf32>
    %149 = tpu.matmul %147, %148, %cst_89 {dimension_numbers = #tpu.dot_dimension_numbers<[1], [0], [0], [1], [0, 0, 1, 1], [], []>} : vector<16x32xbf16>, vector<32x128xbf16>, vector<16x128xf32> -> vector<16x128xf32>
    %150 = vector.broadcast %44 : vector<1x128xf32> to vector<16x128xf32>
    %151 = arith.addf %149, %150 : vector<16x128xf32>
    %c0_90 = arith.constant 0 : index
    %c0_91 = arith.constant 0 : index
    %152 = vector.load %arg22[%c0_90, %c0_91] : memref<16x128xf32, #tpu.memory_space<vmem>>, vector<16x128xf32>
    tpu.vector_store %arg22[%c0_90, %c0_91], %151 {strides = array<i32>} : memref<16x128xf32, #tpu.memory_space<vmem>>, vector<16x128xf32>,
    return
  }
}

</mosaic_0001>

<bundles_post_ra>
// kernel: tile.9
= control target key start
LH: loop header
LB: loop body
LE: loop exit
PB: predicated region body
PF: predicated region fallthrough
CT: control target
= control target key end

     0   :  { %vm7_vm0 = vcmask 23552   ;;  %s37_s8 = smov 3   ;;  %s38_s9 = smov 6   ;;  %vm13_vm1 = vcmask 97352   ;;  %vm19_vm2 = vcmask 72752   ;;  %vm25_vm3 = vcmask 48152   ;;  %s55_s0 = inlined_call_operand.vmem [shape: s32[4,3], index: 0, kind: input, shape index: {}]   ;;  %s56_s1 = inlined_call_operand.vmem [shape: s32[12], index: 1, kind: output, shape index: {}]  }
   0x1   :  { %v4_v0 = vld [vmem:[%s55_s0] sm:$0xf]  ;;  %s36_s0 = smov 9  }
   0x2   :  { %5 = vst [vmem:[#allocation1] sm:$0xf] %v4_v0 }
   0x9   :  { %v10_v1 = vld [vmem:[#allocation1 + $0x3] sm:$0x1]   ;;  %v22_v2 = vld [vmem:[#allocation1 + $0x1] sm:$0x1]   ;;  %v6_v3 = vld [vmem:[#allocation1] sm:$0x1]  }
   0xa   :  { %11 = vrot.lane.b32.xlu0 %v10_v1, %s36_s0  ;;  %23 = vrot.lane.b32.xlu1 %v22_v2, %s37_s8  ;;  %v16_v4 = vld [vmem:[#allocation1 + $0x2] sm:$0x1]   ;;  %8 = vst.msk [vmem:[#allocation0] sm:$0x1] %vm7_vm0, %v6_v3  }
   0xe   :  { %17 = vrot.lane.b32.xlu0 %v16_v4, %s38_s9 }
  0x7c   :  { %v12_v5 = vpop.permute.xlu0 %11   ;;  %v24_v6 = vpop.permute.xlu1 %23  }
  0x7d   :  { %14 = vst.msk [vmem:[#allocation0] sm:$0x1] %vm13_vm1, %v12_v5  }
  0x80   :  { %v18_v7 = vpop.permute.xlu0 %17  }
  0x81   :  { %20 = vst.msk [vmem:[#allocation0] sm:$0x1] %vm19_vm2, %v18_v7  }
  0x82   :  { %26 = vst.msk [vmem:[#allocation0] sm:$0x1] %vm25_vm3, %v24_v6  }
  0x89   :  { %v30_v8 = vld [vmem:[#allocation0] sm:$0x1] }
  0x8a   :  { %32 = vst [vmem:[%s56_s1] sm:$0x1] %v30_v8 }

// kernel: byol_forward.1
= control target key start
LH: loop header
LB: loop body
LE: loop exit
PB: predicated region body
PF: predicated region fallthrough
CT: control target
= control target key end

     0   :  { %s1887_s0 = inlined_call_operand.<no memory space> [shape: f32[1,1], index: 0, kind: input, shape index: {}]   ;;  %s1888_s1 = inlined_call_operand.vmem [shape: f32[16,256], index: 1, kind: input, shape index: {}]   ;;  %s1889_s2 = inlined_call_operand.vmem [shape: f32[32,256], index: 2, kind: input, shape index: {}]   ;;  %s1890_s3 = inlined_call_operand.vmem [shape: f32[16,32], index: 3, kind: input, shape index: {}]   ;;  %s1891_s4 = inlined_call_operand.vmem [shape: f32[16,1], index: 4, kind: input, shape index: {}]   ;;  %s1892_s5 = inlined_call_operand.vmem [shape: f32[16,32], index: 5, kind: input, shape index: {}]   ;;  %s1893_s6 = inlined_call_operand.vmem [shape: f32[1,32], index: 6, kind: input, shape index: {}]   ;;  %s1894_s7 = inlined_call_operand.vmem [shape: f32[32,128], index: 7, kind: input, shape index: {}]   ;;  %s1895_s8 = inlined_call_operand.vmem [shape: f32[1,128], index: 8, kind: input, shape index: {}]   ;;  %s1896_s9 = inlined_call_operand.vmem [shape: f32[16,32], index: 9, kind: input, shape index: {}, may-alias: {9,23}]   ;;  %s1897_s10 = inlined_call_operand.vmem [shape: f32[16,1], index: 10, kind: input, shape index: {}, may-alias: {10,24}]   ;;  %s1898_s11 = inlined_call_operand.vmem [shape: f32[16,32], index: 11, kind: input, shape index: {}, may-alias: {11,25}]   ;;  %s1899_s12 = inlined_call_operand.vmem [shape: f32[1,32], index: 12, kind: input, shape index: {}, may-alias: {12,26}]   ;;  %s1900_s13 = inlined_call_operand.vmem [shape: f32[32,128], index: 13, kind: input, shape index: {}, may-alias: {13,27}]   ;;  %s1901_s14 = inlined_call_operand.vmem [shape: f32[1,128], index: 14, kind: input, shape index: {}, may-alias: {14,28}]   ;;  %s1902_s15 = inlined_call_operand.vmem [shape: f32[16,16], index: 15, kind: input, shape index: {}]   ;;  %s1903_s16 = inlined_call_operand.vmem [shape: f32[16,1], index: 16, kind: input, shape index: {}]   ;;  %s1904_s17 = inlined_call_operand.vmem [shape: f32[128,32], index: 17, kind: input, shape index: {}]   ;;  %s1905_s18 = inlined_call_operand.vmem [shape: f32[1,32], index: 18, kind: input, shape index: {}]   ;;  %s1906_s19 = inlined_call_operand.vmem [shape: f32[32,128], index: 19, kind: input, shape index: {}]   ;;  %s1907_s20 = inlined_call_operand.vmem [shape: f32[1,128], index: 20, kind: input, shape index: {}]   ;;  %s1908_s21 = inlined_call_operand.hbm [shape: f32[16,128], index: 21, kind: output, shape index: {0}]   ;;  %s1909_s22 = inlined_call_operand.hbm [shape: f32[16,128], index: 22, kind: output, shape index: {1}]   ;;  %s1910_s23 = inlined_call_operand.vmem [shape: f32[16,32], index: 23, kind: output, shape index: {2}, may-alias: {9,23}]   ;;  %s1911_s24 = inlined_call_operand.vmem [shape: f32[16,1], index: 24, kind: output, shape index: {3}, may-alias: {10,24}]   ;;  %s1912_s25 = inlined_call_operand.vmem [shape: f32[16,32], index: 25, kind: output, shape index: {4}, may-alias: {11,25}]   ;;  %s1913_s26 = inlined_call_operand.vmem [shape: f32[1,32], index: 26, kind: output, shape index: {5}, may-alias: {12,26}]   ;;  %s1914_s27 = inlined_call_operand.vmem [shape: f32[32,128], index: 27, kind: output, shape index: {6}, may-alias: {13,27}]   ;;  %s1915_s28 = inlined_call_operand.vmem [shape: f32[1,128], index: 28, kind: output, shape index: {7}, may-alias: {14,28}]  }
   0x1   :  { %1927 = sst [smem:[#allocation9_spill]] %s1887_s0 }
   0x2   :  { %1928 = sst [smem:[#allocation10_spill]] %s1888_s1 }
   0x3   :  { %1929 = sst [smem:[#allocation11_spill]] %s1889_s2 }
   0x4   :  { %1930 = sst [smem:[#allocation12_spill]] %s1890_s3 }
   0x5   :  { %1931 = sst [smem:[#allocation13_spill]] %s1891_s4 }
   0x6   :  { %1932 = sst [smem:[#allocation14_spill]] %s1892_s5 }
   0x7   :  { %1933 = sst [smem:[#allocation15_spill]] %s1893_s6 }
   0x8   :  { %1934 = sst [smem:[#allocation16_spill]] %s1894_s7 }
   0x9   :  { %1935 = sst [smem:[#allocation17_spill]] %s1895_s8 }
   0xa   :  { %1936 = sst [smem:[#allocation18_spill]] %s1896_s9  ;;  %s1940_s9 = sld [smem:[#allocation9_spill]] }
   0xb   :  { %1937 = sst [smem:[#allocation19_spill]] %s1897_s10 }
   0xc   :  { %1938 = sst [smem:[#allocation20_spill]] %s1898_s11 }
   0xd   :  { %1939 = sst [smem:[#allocation21_spill]] %s1899_s12 }
  0x10   :  { %v34_v0 = vstv %s1940_s9 }
  0x11   :  { %35 = vst [vmem:[#allocation2] sm:$0x1] %v34_v0 }
  0x12   :  { %36 = vsyncpa [#allocation4], 0  ;;  %s1941_s6 = sld [smem:[#allocation11_spill]]  ;;  %v1294_v8 = vmov 0   ;;  %s1942_s11 = sld [smem:[#allocation13_spill]] }
  0x13   :  { %273 = vmatprep.mubr.bf16.mxu0 %v1294_v8  ;;  %1204 = vset.pattern.permute.xlu0 %v1294_v8  ;;  %s1943_s7 = sld [smem:[#allocation12_spill]] }
  0x14   :  { %336 = vmatprep.mubr.bf16.mxu1 %v1294_v8  ;;  %1205 = vset.pattern.permute.xlu1 %v1294_v8 }
  0x18   :  { %v199_v1 = vld [vmem:[%s1941_s6 + $0x8] sm:$0xff]  ;;  %v201_v2 = vld [vmem:[%s1941_s6 + $0x18] sm:$0xff]  ;;  %v198_v3 = vld [vmem:[%s1941_s6] sm:$0xff] }
  0x19   :  { %v1458_v4 = vpack.c.bf16 %v201_v2, %v199_v1  ;;  %v200_v5 = vld [vmem:[%s1941_s6 + $0x10] sm:$0xff]  ;;  %v203_v6 = vld [vmem:[%s1941_s6 + $0x28] sm:$0xff]  ;;  %v205_v7 = vld [vmem:[%s1941_s6 + $0x38] sm:$0xff] }
  0x1a   :  { %v1471_v9 = vpack.c.bf16 %v200_v5, %v198_v3  ;;  %v1473_v10 = vpack.c.bf16 %v205_v7, %v203_v6  ;;  %v202_v11 = vld [vmem:[%s1941_s6 + $0x20] sm:$0xff]  ;;  %v204_v12 = vld [vmem:[%s1941_s6 + $0x30] sm:$0xff]  ;;  %v1498_v16 = vld [vmem:[%s1943_s7 + $0x8] sm:$0xff] }
  0x1b   :  { %241 = vmatprep.subr.bf16.mxu0 %v1458_v4  ;;  %v213_v13 = vld [vmem:[%s1942_s11] sm:$0xff]  ;;  %v1488_v14 = vpack.c.bf16 %v204_v12, %v202_v11 }
  0x1c   :  { %242 = vmatpush1.bf16.msra.mxu0 %v1471_v9  ;;  %v1493_v15 = vld [vmem:[%s1943_s7] sm:$0xff]  ;;  %230 = vperm.xlu0 %1204, %v213_v13  }
  0x1d   :  { %37 = vsyncpa [#allocation6], 0  ;;  %243 = vmatprep.subr.bf16.mxu0 %v1473_v10  ;;  %v214_v17 = vld [vmem:[%s1942_s11 + $0x8] sm:$0xff]  ;;  %v223_v18 = vpack.c.bf16 %v1498_v16, %v1493_v15  ;;  %vm179_vm0 = vcmask 261120   ;;  %v209_v19 = vld [vmem:[%s1903_s16] sm:$0xff]  ;;  %vm300_vm1 = vcmask 130048   ;;  %v86_v40 = vlaneseq }
  0x1e   :  { %292 = vperm.xlu1 %1205, %v209_v19   ;;  %v210_v20 = vld [vmem:[%s1903_s16 + $0x8] sm:$0xff]  ;;  %v206_v36 = vld [vmem:[%s1902_s15] sm:$0xff]  ;;  %s1944_s29 = sld [smem:[#allocation19_spill]]  ;;  %vm182_vm2 = vcmask 7168   ;;  %s1945_s5 = sld [smem:[#allocation10_spill]]  ;;  %vm1296_vm3 = vmmov 0  }
  0x1f   :  { %v207_v37 = vld [vmem:[%s1902_s15 + $0x8] sm:$0xff]  ;;  %v87_v41 = vshrl.u32 %v86_v40, 7  ;;  %v1524_v42 = vld [vmem:[#allocation2] sm:$0x1]  ;;  %s1947_s1 = sld [smem:[#allocation16_spill]]  ;;  %s1948_s16 = sld [smem:[#allocation20_spill]] }
  0x20   :  { %244 = vmatpush1.bf16.msra.mxu0 %v1488_v14  ;;  %235 = vperm.xlu0 %1204, %v214_v17   ;;  %v1520_v39 = vpack.c.bf16 %v207_v37, %v206_v36  ;;  %v82_v43 = vsub.f32 1.0, %v1524_v42  ;;  %v1295_v37 = vmov 0.0   ;;  %s1949_s2 = sld [smem:[#allocation18_spill]]  ;;  %s1950_s10 = sld [smem:[#allocation15_spill]]  ;;  %vm187_vm4 = vcmask 253952  }
  0x21   :  { %v1527_v44 = vsub.s32 0, %v87_v41  ;;  %1133 = vmatprep.subr.bf16.mxu0 %v1295_v37 }
  0x22   :  { %297 = vperm.xlu1 %1205, %v210_v20  }
  0x23   :  { %1090 = vmatmul.mubr.msk.bf16.vlgmr.msra.gmra.mrb[0].mxu0 %vm179_vm0, %v223_v18  ;;  %v102_v45 = vrot.slane %v82_v43, %v1527_v44  ;;  %v89_v46 = vrot.slane %v1524_v42, %v1527_v44 }
  0x24   :  { %v112_v47 = vld [vmem:[%s1944_s29 + $0x8] sm:$0xff]  ;;  %v111_v51 = vld [vmem:[%s1944_s29] sm:$0xff]  ;;  %s1946_s29 = sld [smem:[#allocation14_spill]]  ;;  %1135 = vmatprep.mubr.msk.bf16.mxu0 %vm1296_vm3, %v1295_v37 }
  0x25   :  { %v115_v48 = vmul.f32 %v112_v47, %v89_v46  ;;  %v120_v49 = vmul.f32 %v214_v17, %v102_v45  ;;  %v114_v52 = vmul.f32 %v111_v51, %v89_v46  ;;  %v119_v53 = vmul.f32 %v213_v13, %v102_v45  ;;  %v1557_v20 = vld [vmem:[%s1945_s5] sm:$0xff]  ;;  %v1609_v47 = vld [vmem:[%s1947_s1 + $0x18] sm:$0xff] }
  0x26   :  { %v1594_v41 = vld [vmem:[%s1947_s1] sm:$0xff] }
  0x27   :  { %v122_v50 = vadd.f32 %v120_v49, %v115_v48  ;;  %v121_v54 = vadd.f32 %v119_v53, %v114_v52  ;;  %v123_v48 = vld [vmem:[%s1948_s16] sm:$0xff]  ;;  %v124_v49 = vld [vmem:[%s1948_s16 + $0x8] sm:$0xff]  ;;  %s1952_s16 = sld [smem:[#allocation21_spill]] }
  0x28   :  { %v83_v51 = vld [vmem:[%s1949_s2] sm:$0xff]  ;;  %v84_v52 = vld [vmem:[%s1949_s2 + $0x8] sm:$0xff]  ;;  %s1951_s2 = sld [smem:[#allocation17_spill]] }
  0x29   :  { %184 = vst.msk [vmem:[%s1911_s24 + $0x8] sm:$0xff] %vm182_vm2, %v122_v50  ;;  %183 = vst.msk [vmem:[%s1911_s24] sm:$0xff] %vm182_vm2, %v121_v54  ;;  %v154_v53 = vld [vmem:[%s1900_s13] sm:$0xff] }
  0x9b   :  { %v231_v21 = vpop.permute.xlu0 %230 }
  0x9d   :  { %v1546_v55 = vpop.permute.xlu1 %292 }
  0x9f   :  { %v236_v25 = vpop.permute.xlu0 %235 }
  0xa1   :  { %v1548_v57 = vpop.permute.xlu1 %297 }
  0xf6   :  { %v275_v22 = vpop.f32.mrb[0].mxu0 }
  0xf7   :  { %v276_v23 = vadd.f32 %v275_v22, %v231_v21  ;;  %v277_v24 = vpop.f32.mrb[1].mxu0 }
  0xf8   :  { %v278_v26 = vadd.f32 %v277_v24, %v231_v21  ;;  %v279_v27 = vpop.f32.mrb[2].mxu0  ;;  %v1562_v21 = vld [vmem:[%s1945_s5 + $0x8] sm:$0xff] }
  0xf9   :  { %v280_v28 = vadd.f32 %v279_v27, %v236_v25  ;;  %v281_v29 = vpop.f32.mrb[3].mxu0  ;;  %v284_v31 = vmax.f32 %v276_v23, 0.0  ;;  %v1567_v23 = vld [vmem:[%s1945_s5 + $0x10] sm:$0xff] }
  0xfa   :  { %v282_v30 = vadd.f32 %v281_v29, %v236_v25  ;;  %v285_v33 = vmax.f32 %v278_v26, 0.0  ;;  %v1573_v26 = vld [vmem:[%s1945_s5 + $0x18] sm:$0xff] }
  0xfb   :  { %v286_v32 = vmax.f32 %v280_v28, 0.0 }
  0xfc   :  { %v287_v34 = vmax.f32 %v282_v30, 0.0 }
  0xfd   :  { %v288_v35 = vpack.c.bf16 %v286_v32, %v284_v31 }
  0xfe   :  { %v289_v38 = vpack.c.bf16 %v287_v34, %v285_v33  ;;  %v215_v34 = vld [vmem:[%s1946_s29] sm:$0xff] }
 0x100   :  { %304 = vmatprep.subr.bf16.mxu1 %v289_v38 }
 0x101   :  { %305 = vmatpush1.bf16.msra.mxu1 %v288_v35 }
 0x102   :  { %1190 = vmatprep.subr.bf16.mxu1 %v289_v38 }
 0x104   :  { %1091 = vmatmul.mubr.msk.bf16.vlgmr.msra.gmra.mrb[0].mxu1 %vm300_vm1, %v1520_v39 }
 0x10a   :  { %1192 = vmatpush1.bf16.xpose.msra.mxu1 %v288_v35  ;;  %v216_v35 = vld [vmem:[%s1946_s29 + $0x8] sm:$0xff] }
 0x10b   :  { %v463_v36 = vpack.c.bf16 %v216_v35, %v215_v34  ;;  %1139 = vmatprep.subr.bf16.mxu1 %v1295_v37 }
 0x10d   :  { %1134 = vmatpush3.bf16.msra.mxu0 %v463_v36 }
 0x10e   :  { %1147 = vmatprep.subr.bf16.mxu0 %v1295_v37 }
 0x1d7   :  { %v338_v56 = vpop.f32.mrb[0].mxu1 }
 0x1d8   :  { %v339_v58 = vadd.f32 %v338_v56, %v1546_v55  ;;  %v340_v59 = vpop.f32.mrb[1].mxu1 }
 0x1d9   :  { %v341_v60 = vadd.f32 %v340_v59, %v1546_v55  ;;  %v342_v61 = vpop.f32.mrb[2].mxu1 }
 0x1da   :  { %v1092_v62 = vmul.f32 -1.442695, %v339_v58  ;;  %v343_v63 = vadd.f32 %v342_v61, %v1548_v57  ;;  %v344_v0 = vpop.f32.mrb[3].mxu1  ;;  %v156_v61 = vld [vmem:[%s1900_s13 + $0x10] sm:$0xff] }
 0x1db   :  { %v1093_v1 = vmul.f32 -1.442695, %v341_v60  ;;  %v345_v2 = vadd.f32 %v344_v0, %v1548_v57  ;;  %v155_v60 = vld [vmem:[%s1900_s13 + $0x8] sm:$0xff] }
 0x1dc   :  { %1206 = vpow2.f32 %v1092_v62  ;;  %v1094_v3 = vmul.f32 -1.442695, %v343_v63  ;;  %v157_v62 = vld [vmem:[%s1900_s13 + $0x18] sm:$0xff] }
 0x1dd   :  { %1208 = vpow2.f32 %v1093_v1  ;;  %v1095_v5 = vmul.f32 -1.442695, %v345_v2 }
 0x1de   :  { %1210 = vpow2.f32 %v1094_v3 }
 0x1df   :  { %1212 = vpow2.f32 %v1095_v5 }
 0x1e6   :  { %v1207_v6 = vpop.eup %1206 }
 0x1e7   :  { %v1209_v7 = vpop.eup %1208  ;;  %v359_v11 = vadd.f32 1.0, %v1207_v6 }
 0x1e8   :  { %v1211_v12 = vpop.eup %1210  ;;  %v360_v13 = vadd.f32 1.0, %v1209_v7 }
 0x1e9   :  { %v1213_v17 = vpop.eup %1212  ;;  %1214 = vrcp.f32 %v359_v11  ;;  %v361_v18 = vadd.f32 1.0, %v1211_v12 }
 0x1ea   :  { %1216 = vrcp.f32 %v360_v13  ;;  %v362_v19 = vadd.f32 1.0, %v1213_v17 }
 0x1eb   :  { %1218 = vrcp.f32 %v361_v18 }
 0x1ec   :  { %1220 = vrcp.f32 %v362_v19 }
 0x1f3   :  { %v1215_v22 = vpop.eup %1214 }
 0x1f4   :  { %v1217_v24 = vpop.eup %1216  ;;  %v371_v25 = vmul.f32 %v1215_v22, %v1557_v20 }
 0x1f5   :  { %v1219_v27 = vpop.eup %1218  ;;  %v372_v28 = vmul.f32 %v1217_v24, %v1562_v21 }
 0x1f6   :  { %v1221_v29 = vpop.eup %1220  ;;  %v373_v30 = vmul.f32 %v1219_v27, %v1567_v23 }
 0x1f7   :  { %439 = vmatprep.mubr.f32.mxu1 %v372_v28  ;;  %v450_v31 = vadd.f32 %v372_v28, %v371_v25  ;;  %v374_v32 = vmul.f32 %v1221_v29, %v1573_v26 }
 0x1f8   :  { %440 = vmatmul.mubr.f32.vlgmr.msra.gmra.mrb[4].mxu1 %v371_v25 }
 0x1f9   :  { %451 = vadd.xlane.f32.xlu0 %v450_v31  ;;  %444 = vmatprep.mubr.f32.mxu1 %v374_v32  ;;  %v453_v33 = vadd.f32 %v374_v32, %v373_v30 }
 0x1fb   :  { %454 = vadd.xlane.f32.xlu1 %v453_v33 }
 0x1fc   :  { %445 = vmatmul.mubr.f32.gmra.mrb[6].mxu1 %v373_v30 }
 0x1fd   :  { %1143 = vmatprep.mubr.msk.bf16.mxu1 %vm1296_vm3, %v1295_v37 }
 0x20c   :  { %104 = vperm.xlu1 %1205, %v102_v45   ;;  %v1599_v45 = vld [vmem:[%s1947_s1 + $0x8] sm:$0xff] }
 0x20f   :  { %91 = vperm.xlu0 %1204, %v89_v46   ;;  %v1604_v46 = vld [vmem:[%s1947_s1 + $0x10] sm:$0xff] }
 0x210   :  { %712 = vperm.xlu1 %1205, %v122_v50  }
 0x213   :  { %707 = vperm.xlu0 %1204, %v121_v54  }
 0x286   :  { %v452_v40 = vpop.xlane.xlu0 %451 }
 0x287   :  { %v456_v33 = vadd.f32 1e-06, %v452_v40  ;;  %v517_v40 = vpack.c.bf16 %v1599_v45, %v1594_v41 }
 0x288   :  { %v455_v38 = vpop.xlane.xlu1 %454 }
 0x289   :  { %1222 = vrcp.f32 %v456_v33  ;;  %1140 = vmatpush3.bf16.msra.mxu1 %v517_v40  ;;  %v1098_v40 = vld [vmem:[%s1951_s2] ss:$0 sm:$0xff] }
 0x28a   :  { %1141 = vmatprep.subr.bf16.mxu1 %v1295_v37 }
 0x28c   :  { %v105_v50 = vpop.permute.xlu1 %104 }
 0x28d   :  { %v129_v54 = vmul.f32 %v215_v34, %v105_v50  ;;  %v130_v56 = vmul.f32 %v216_v35, %v105_v50  ;;  %v107_v58 = vmul.f32 %v1493_v15, %v105_v50  ;;  %v108_v59 = vmul.f32 %v1498_v16, %v105_v50 }
 0x28e   :  { %v92_v63 = vpop.permute.xlu0 %91  ;;  %v166_v0 = vmul.f32 %v1594_v41, %v105_v50  ;;  %v167_v1 = vmul.f32 %v1599_v45, %v105_v50  ;;  %v168_v15 = vmul.f32 %v1604_v46, %v105_v50  ;;  %v169_v16 = vmul.f32 %v1609_v47, %v105_v50  ;;  %v572_v41 = vld [vmem:[%s1904_s17 + $0x10] sm:$0xff] }
 0x28f   :  { %v125_v2 = vmul.f32 %v123_v48, %v92_v63  ;;  %v126_v3 = vmul.f32 %v124_v49, %v92_v63  ;;  %v94_v5 = vmul.f32 %v92_v63, %v83_v51  ;;  %v95_v6 = vmul.f32 %v92_v63, %v84_v52 }
 0x290   :  { %v158_v7 = vmul.f32 %v154_v53, %v92_v63  ;;  %v159_v11 = vmul.f32 %v155_v60, %v92_v63  ;;  %v160_v12 = vmul.f32 %v156_v61, %v92_v63  ;;  %v161_v13 = vmul.f32 %v157_v62, %v92_v63  ;;  %v575_v60 = vld [vmem:[%s1904_s17 + $0x28] sm:$0xff]  ;;  %v576_v62 = vld [vmem:[%s1904_s17 + $0x30] sm:$0xff]  ;;  %v577_v63 = vld [vmem:[%s1904_s17 + $0x38] sm:$0xff] }
 0x291   :  { %v1641_v17 = vadd.f32 %v129_v54, %v125_v2  ;;  %v1643_v18 = vadd.f32 %v130_v56, %v126_v3  ;;  %v1645_v19 = vadd.f32 %v107_v58, %v94_v5  ;;  %v1647_v22 = vadd.f32 %v108_v59, %v95_v6  ;;  %v570_v56 = vld [vmem:[%s1904_s17] sm:$0xff]  ;;  %v571_v58 = vld [vmem:[%s1904_s17 + $0x8] sm:$0xff]  ;;  %v580_v2 = vld [vmem:[%s1904_s17 + $0x50] sm:$0xff] }
 0x292   :  { %v1649_v24 = vadd.f32 %v166_v0, %v158_v7  ;;  %v1651_v25 = vadd.f32 %v167_v1, %v159_v11  ;;  %v1653_v27 = vadd.f32 %v168_v15, %v160_v12  ;;  %v1655_v28 = vadd.f32 %v169_v16, %v161_v13  ;;  %v574_v59 = vld [vmem:[%s1904_s17 + $0x20] sm:$0xff]  ;;  %v579_v15 = vld [vmem:[%s1904_s17 + $0x48] sm:$0xff]  ;;  %v581_v3 = vld [vmem:[%s1904_s17 + $0x58] sm:$0xff] }
 0x293   :  { %185 = vst.msk [vmem:[%s1912_s25] sm:$0xff] %vm179_vm0, %v1641_v17  ;;  %186 = vst.msk [vmem:[%s1912_s25 + $0x8] sm:$0xff] %vm179_vm0, %v1643_v18  ;;  %v926_v29 = vpack.c.bf16 %v1643_v18, %v1641_v17  ;;  %v704_v30 = vpack.c.bf16 %v1647_v22, %v1645_v19  ;;  %v457_v34 = vadd.f32 1e-06, %v455_v38  ;;  %v1223_v48 = vpop.eup %1222  ;;  %v518_v38 = vpack.c.bf16 %v1609_v47, %v1604_v46  ;;  %v573_v46 = vld [vmem:[%s1904_s17 + $0x18] sm:$0xff]  ;;  %v578_v1 = vld [vmem:[%s1904_s17 + $0x40] sm:$0xff] }
 0x294   :  { %180 = vst.msk [vmem:[%s1910_s23] sm:$0xff] %vm179_vm0, %v1645_v19  ;;  %181 = vst.msk [vmem:[%s1910_s23 + $0x8] sm:$0xff] %vm179_vm0, %v1647_v22  ;;  %v980_v31 = vpack.c.bf16 %v1651_v25, %v1649_v24  ;;  %v981_v32 = vpack.c.bf16 %v1655_v28, %v1653_v27  ;;  %v586_v45 = vpack.c.bf16 %v571_v58, %v570_v56  ;;  %v582_v6 = vld [vmem:[%s1904_s17 + $0x60] sm:$0xff]  ;;  %v583_v7 = vld [vmem:[%s1904_s17 + $0x68] sm:$0xff]  ;;  %v713_v22 = vpop.permute.xlu1 %712 }
 0x295   :  { %189 = vst [vmem:[%s1914_s27] sm:$0xff] %v1649_v24  ;;  %190 = vst [vmem:[%s1914_s27 + $0x8] sm:$0xff] %v1651_v25  ;;  %1224 = vrcp.f32 %v457_v34  ;;  %1142 = vmatpush3.bf16.msra.mxu1 %v518_v38  ;;  %v587_v47 = vpack.c.bf16 %v573_v46, %v572_v41  ;;  %v588_v61 = vpack.c.bf16 %v575_v60, %v574_v59  ;;  %v1096_v12 = vld [vmem:[%s1950_s10] ss:$0 sm:$0xff]  ;;  %v646_v60 = vld [vmem:[%s1906_s19 + $0x8] sm:$0xff] }
 0x296   :  { %191 = vst [vmem:[%s1914_s27 + $0x10] sm:$0xff] %v1653_v27  ;;  %192 = vst [vmem:[%s1914_s27 + $0x18] sm:$0xff] %v1655_v28  ;;  %1167 = vmatprep.subr.bf16.mxu1 %v1295_v37  ;;  %v589_v0 = vpack.c.bf16 %v577_v63, %v576_v62  ;;  %v590_v16 = vpack.c.bf16 %v579_v15, %v578_v1  ;;  %v591_v5 = vpack.c.bf16 %v581_v3, %v580_v2  ;;  %v645_v59 = vld [vmem:[%s1906_s19] sm:$0xff]  ;;  %v647_v17 = vld [vmem:[%s1906_s19 + $0x10] sm:$0xff] }
 0x297   :  { %v592_v11 = vpack.c.bf16 %v583_v7, %v582_v6  ;;  %v648_v18 = vld [vmem:[%s1906_s19 + $0x18] sm:$0xff]  ;;  %v1100_v62 = vld [vmem:[%s1905_s18] ss:$0 sm:$0xff] }
 0x298   :  { %v176_v25 = vld [vmem:[%s1951_s2] sm:$0x1] }
 0x29f   :  { %v1225_v49 = vpop.eup %1224 }
 0x2cb   :  { %v441_v35 = vpop.f32.mrb[4].mxu1 }
 0x2cc   :  { %v443_v36 = vpop.f32.mrb[5].mxu1  ;;  %v459_v51 = vmul.f32 %v1223_v48, %v441_v35 }
 0x2cf   :  { %v446_v50 = vpop.f32.mrb[6].mxu1 }
 0x2d0   :  { %v461_v52 = vmul.f32 %v1225_v49, %v446_v50  ;;  %v448_v53 = vpop.f32.mrb[7].mxu1 }
 0x2d1   :  { %v585_v53 = vld [vmem:[%s1904_s17 + $0x78] sm:$0xff] }
 0x2d2   :  { %v462_v54 = vpack.c.bf16 %v461_v52, %v459_v51  ;;  %v584_v52 = vld [vmem:[%s1904_s17 + $0x70] sm:$0xff] }
 0x2d4   :  { %1136 = vmatmul.mubr.msk.bf16.vlgmr.msra.gmra.mrb[4].mxu0 %vm300_vm1, %v462_v54  ;;  %v593_v54 = vpack.c.bf16 %v585_v53, %v584_v52 }
 0x2d5   :  { %1163 = vmatprep.mubr.msk.bf16.mxu0 %vm1296_vm3, %v1295_v37  ;;  %1148 = vmatpush3.bf16.msra.mxu0 %v586_v45 }
 0x2d6   :  { %1149 = vmatprep.subr.bf16.mxu0 %v1295_v37 }
 0x2d9   :  { %1150 = vmatpush3.bf16.msra.mxu0 %v587_v47 }
 0x2da   :  { %1151 = vmatprep.subr.bf16.mxu0 %v1295_v37 }
 0x2dd   :  { %1152 = vmatpush3.bf16.msra.mxu0 %v588_v61  ;;  %v649_v61 = vpack.c.bf16 %v646_v60, %v645_v59 }
 0x2de   :  { %1153 = vmatprep.subr.bf16.mxu0 %v1295_v37 }
 0x2e1   :  { %1154 = vmatpush3.bf16.msra.mxu0 %v589_v0 }
 0x2e2   :  { %1155 = vmatprep.subr.bf16.mxu0 %v1295_v37 }
 0x2e5   :  { %1156 = vmatpush3.bf16.msra.mxu0 %v590_v16 }
 0x2e6   :  { %1157 = vmatprep.subr.bf16.mxu0 %v1295_v37 }
 0x2e9   :  { %1158 = vmatpush3.bf16.msra.mxu0 %v591_v5 }
 0x2ea   :  { %1159 = vmatprep.subr.bf16.mxu0 %v1295_v37 }
 0x2ed   :  { %1160 = vmatpush3.bf16.msra.mxu0 %v592_v11 }
 0x2ee   :  { %1161 = vmatprep.subr.bf16.mxu0 %v1295_v37 }
 0x2f1   :  { %1162 = vmatpush3.bf16.msra.mxu0 %v593_v54 }
 0x2f2   :  { %1175 = vmatprep.subr.bf16.mxu0 %v1295_v37 }
 0x3a7   :  { %v507_v13 = vpop.f32.mrb[4].mxu0 }
 0x3a8   :  { %v508_v33 = vadd.f32 %v1096_v12, %v507_v13  ;;  %v1137_v34 = vpop.f32.mrb[5].mxu0 }
 0x3a9   :  { %v510_v35 = vpop.f32.mrb[6].mxu0 }
 0x3aa   :  { %v511_v36 = vadd.f32 %v1096_v12, %v510_v35  ;;  %v1138_v48 = vpop.f32.mrb[7].mxu0  ;;  %v514_v49 = vmax.f32 %v508_v33, 0.0 }
 0x3ac   :  { %v515_v50 = vmax.f32 %v511_v36, 0.0 }
 0x3ae   :  { %v516_v51 = vpack.c.bf16 %v515_v50, %v514_v49 }
 0x3b0   :  { %1144 = vmatmul.mubr.msk.bf16.vlgmr.msra.gmra.mrb[8].mxu1 %vm179_vm0, %v516_v51 }
 0x3b1   :  { %1171 = vmatprep.mubr.msk.bf16.mxu1 %vm1296_vm3, %v1295_v37  ;;  %1168 = vmatpush3.bf16.msra.mxu1 %v649_v61 }
 0x3b2   :  { %1169 = vmatprep.subr.bf16.mxu1 %v1295_v37 }
 0x483   :  { %v562_v38 = vpop.f32.mrb[8].mxu1 }
 0x484   :  { %v1145_v56 = vpop.f32.mrb[9].mxu1  ;;  %v563_v41 = vadd.f32 %v1098_v40, %v562_v38 }
 0x485   :  { %v565_v58 = vpop.f32.mrb[10].mxu1 }
 0x486   :  { %v566_v45 = vadd.f32 %v1098_v40, %v565_v58  ;;  %v1146_v46 = vpop.f32.mrb[11].mxu1 }
 0x488   :  { %v569_v47 = vpack.c.bf16 %v566_v45, %v563_v41 }
 0x48a   :  { %1164 = vmatmul.mubr.bf16.vlgmr.msra.gmra.mrb[8].mxu0 %v569_v47 }
 0x48b   :  { %1176 = vmatpush3.bf16.msra.mxu0 %v926_v29  ;;  %1177 = vmatprep.mubr.msk.bf16.mxu0 %vm1296_vm3, %v1295_v37  ;;  %v650_v29 = vpack.c.bf16 %v648_v18, %v647_v17 }
 0x48d   :  { %1170 = vmatpush3.bf16.msra.mxu1 %v650_v29 }
 0x48e   :  { %718 = vmatprep.subr.bf16.mxu1 %v1471_v9  ;;  %v1101_v9 = vld [vmem:[%s1907_s20] ss:$0 sm:$0xff] }
 0x55d   :  { %v635_v63 = vpop.f32.mrb[8].mxu0 }
 0x55e   :  { %v636_v0 = vadd.f32 %v1100_v62, %v635_v63  ;;  %v1165_v1 = vpop.f32.mrb[9].mxu0 }
 0x55f   :  { %v638_v15 = vpop.f32.mrb[10].mxu0 }
 0x560   :  { %v639_v16 = vadd.f32 %v1100_v62, %v638_v15  ;;  %v1166_v2 = vpop.f32.mrb[11].mxu0  ;;  %v642_v3 = vmax.f32 %v636_v0, 0.0 }
 0x562   :  { %v643_v5 = vmax.f32 %v639_v16, 0.0 }
 0x564   :  { %v644_v6 = vpack.c.bf16 %v643_v5, %v642_v3 }
 0x566   :  { %1172 = vmatmul.mubr.msk.bf16.vlgmr.msra.gmra.mrb[12].mxu1 %vm179_vm0, %v644_v6 }
 0x567   :  { %719 = vmatpush1.bf16.msra.mxu1 %v1458_v4  ;;  %750 = vmatprep.mubr.bf16.mxu1 %v1294_v8 }
 0x568   :  { %720 = vmatprep.subr.bf16.mxu1 %v1488_v14 }
 0x56b   :  { %721 = vmatpush1.bf16.msra.mxu1 %v1473_v10  ;;  %v708_v10 = vpop.permute.xlu0 %707 }
 0x56e   :  { %1103 = vmatmul.mubr.msk.bf16.vlgmr.msra.gmra.mrb[16].mxu1 %vm179_vm0, %v704_v30 }
 0x56f   :  { %799 = vmatprep.mubr.bf16.mxu1 %v1294_v8 }
 0x639   :  { %v695_v7 = vpop.f32.mrb[12].mxu1 }
 0x63a   :  { %v696_v11 = vadd.f32 %v1101_v9, %v695_v7  ;;  %v1173_v4 = vpop.f32.mrb[13].mxu1 }
 0x63b   :  { %v698_v12 = vpop.f32.mrb[14].mxu1 }
 0x63c   :  { %702 = vst [vmem:[#allocation3] sm:$0xff] %v696_v11  ;;  %v699_v13 = vadd.f32 %v1101_v9, %v698_v12  ;;  %v1174_v14 = vpop.f32.mrb[15].mxu1 }
 0x63e   :  { %703 = vst [vmem:[#allocation3 + $0x8] sm:$0xff] %v699_v13 }
 0x641   :  { %v752_v33 = vpop.f32.mrb[16].mxu1 }
 0x642   :  { %v753_v34 = vadd.f32 %v752_v33, %v708_v10  ;;  %v754_v19 = vpop.f32.mrb[17].mxu1 }
 0x643   :  { %v755_v30 = vadd.f32 %v754_v19, %v708_v10  ;;  %v756_v35 = vpop.f32.mrb[18].mxu1 }
 0x644   :  { %v757_v8 = vadd.f32 %v756_v35, %v713_v22  ;;  %v758_v36 = vpop.f32.mrb[19].mxu1  ;;  %v761_v49 = vmax.f32 %v753_v34, 0.0 }
 0x645   :  { %v759_v48 = vadd.f32 %v758_v36, %v713_v22  ;;  %v762_v51 = vmax.f32 %v755_v30, 0.0 }
 0x646   :  { %v763_v50 = vmax.f32 %v757_v8, 0.0 }
 0x647   :  { %v764_v52 = vmax.f32 %v759_v48, 0.0 }
 0x648   :  { %v765_v53 = vpack.c.bf16 %v763_v50, %v761_v49 }
 0x649   :  { %v766_v54 = vpack.c.bf16 %v764_v52, %v762_v51 }
 0x64b   :  { %767 = vmatprep.subr.bf16.mxu1 %v766_v54 }
 0x64c   :  { %768 = vmatpush1.bf16.msra.mxu1 %v765_v53 }
 0x64d   :  { %1194 = vmatprep.subr.bf16.mxu1 %v766_v54 }
 0x64f   :  { %1104 = vmatmul.mubr.msk.bf16.vlgmr.msra.gmra.mrb[20].mxu1 %vm300_vm1, %v1520_v39 }
 0x655   :  { %1196 = vmatpush1.bf16.xpose.msra.mxu1 %v765_v53 }
 0x656   :  { %1181 = vmatprep.subr.bf16.mxu1 %v1295_v37 }
 0x722   :  { %v801_v40 = vpop.f32.mrb[20].mxu1 }
 0x723   :  { %v802_v38 = vadd.f32 %v801_v40, %v1546_v55  ;;  %v803_v56 = vpop.f32.mrb[21].mxu1 }
 0x724   :  { %v804_v58 = vadd.f32 %v803_v56, %v1546_v55  ;;  %v805_v41 = vpop.f32.mrb[22].mxu1 }
 0x725   :  { %v1105_v45 = vmul.f32 -1.442695, %v802_v38  ;;  %v806_v46 = vadd.f32 %v805_v41, %v1548_v57  ;;  %v807_v47 = vpop.f32.mrb[23].mxu1 }
 0x726   :  { %v1106_v59 = vmul.f32 -1.442695, %v804_v58  ;;  %v808_v60 = vadd.f32 %v807_v47, %v1548_v57 }
 0x727   :  { %1226 = vpow2.f32 %v1105_v45  ;;  %v1107_v61 = vmul.f32 -1.442695, %v806_v46 }
 0x728   :  { %1228 = vpow2.f32 %v1106_v59  ;;  %v1108_v39 = vmul.f32 -1.442695, %v808_v60 }
 0x729   :  { %1230 = vpow2.f32 %v1107_v61 }
 0x72a   :  { %1232 = vpow2.f32 %v1108_v39 }
 0x731   :  { %v1227_v17 = vpop.eup %1226 }
 0x732   :  { %v1229_v18 = vpop.eup %1228  ;;  %v822_v29 = vadd.f32 1.0, %v1227_v17 }
 0x733   :  { %v1231_v62 = vpop.eup %1230  ;;  %v823_v63 = vadd.f32 1.0, %v1229_v18 }
 0x734   :  { %v1233_v55 = vpop.eup %1232  ;;  %1234 = vrcp.f32 %v822_v29  ;;  %v824_v0 = vadd.f32 1.0, %v1231_v62 }
 0x735   :  { %1236 = vrcp.f32 %v823_v63  ;;  %v825_v1 = vadd.f32 1.0, %v1233_v55 }
 0x736   :  { %1238 = vrcp.f32 %v824_v0 }
 0x737   :  { %1240 = vrcp.f32 %v825_v1 }
 0x73e   :  { %v1235_v15 = vpop.eup %1234 }
 0x73f   :  { %v1237_v57 = vpop.eup %1236  ;;  %v834_v16 = vmul.f32 %v1235_v15, %v1557_v20 }
 0x740   :  { %v1239_v2 = vpop.eup %1238  ;;  %v835_v3 = vmul.f32 %v1237_v57, %v1562_v21 }
 0x741   :  { %v1241_v5 = vpop.eup %1240  ;;  %v836_v6 = vmul.f32 %v1239_v2, %v1567_v23 }
 0x742   :  { %902 = vmatprep.mubr.f32.mxu1 %v835_v3  ;;  %v913_v9 = vadd.f32 %v835_v3, %v834_v16  ;;  %v837_v7 = vmul.f32 %v1241_v5, %v1573_v26  ;;  %v143_v26 = vld [vmem:[%s1950_s10] sm:$0x1] }
 0x743   :  { %903 = vmatmul.mubr.f32.vlgmr.msra.gmra.mrb[24].mxu1 %v834_v16 }
 0x744   :  { %1182 = vmatpush3.bf16.msra.mxu1 %v980_v31  ;;  %914 = vadd.xlane.f32.xlu0 %v913_v9  ;;  %v916_v11 = vadd.f32 %v837_v7, %v836_v6 }
 0x745   :  { %907 = vmatprep.mubr.f32.mxu1 %v837_v7  ;;  %1183 = vmatprep.subr.bf16.mxu1 %v1295_v37 }
 0x746   :  { %917 = vadd.xlane.f32.xlu1 %v916_v11 }
 0x747   :  { %908 = vmatmul.mubr.f32.gmra.mrb[26].mxu1 %v836_v6 }
 0x748   :  { %1184 = vmatpush3.bf16.msra.mxu1 %v981_v32  ;;  %1185 = vmatprep.mubr.msk.bf16.mxu1 %vm1296_vm3, %v1295_v37  ;;  %v133_v37 = vld [vmem:[%s1952_s16] sm:$0x1] }
 0x757   :  { %145 = vperm.xlu1 %1205, %v82_v43  }
 0x75a   :  { %135 = vperm.xlu0 %1204, %v1524_v42   ;;  %v174_v42 = vld [vmem:[%s1901_s14] sm:$0x1]  ;;  %s1297_s14 = smov [#allocation3]  }
 0x7d1   :  { %v915_v21 = vpop.xlane.xlu0 %914 }
 0x7d2   :  { %v919_v14 = vadd.f32 1e-06, %v915_v21 }
 0x7d3   :  { %v918_v20 = vpop.xlane.xlu1 %917 }
 0x7d4   :  { %v920_v10 = vadd.f32 1e-06, %v918_v20  ;;  %1242 = vrcp.f32 %v919_v14 }
 0x7d6   :  { %1244 = vrcp.f32 %v920_v10 }
 0x7d7   :  { %v146_v23 = vpop.permute.xlu1 %145 }
 0x7d8   :  { %v151_v24 = vrot.slane %v146_v23, %v1527_v44 }
 0x7d9   :  { %v136_v43 = vpop.permute.xlu0 %135 }
 0x7da   :  { %v141_v27 = vrot.slane %v136_v43, %v1527_v44  ;;  %v152_v28 = vmul.f32 %v151_v24, %v143_v26  ;;  %v177_v31 = vmul.f32 %v176_v25, %v151_v24 }
 0x7dc   :  { %v142_v32 = vmul.f32 %v141_v27, %v133_v37  ;;  %v175_v4 = vmul.f32 %v174_v42, %v141_v27 }
 0x7de   :  { %v178_v12 = vadd.f32 %v177_v31, %v175_v4  ;;  %v153_v13 = vadd.f32 %v152_v28, %v142_v32  ;;  %v1243_v19 = vpop.eup %1242 }
 0x7e0   :  { %193 = vst [vmem:[%s1915_s28] sm:$0x1] %v178_v12  ;;  %188 = vst.msk [vmem:[%s1913_s26] sm:$0x1] %vm187_vm4, %v153_v13  ;;  %v1245_v22 = vpop.eup %1244  ;;  %v931_v49 = vrot.slane %v153_v13, %v1527_v44  ;;  %s1039_s26 = sshll.u32 %s1297_s14, 4  ;;  %s1040_s26 = int_to_ptr.vmem [resolvable:$true] %s1039_s26 }
 0x7e1   :  { %s1246_s28 = scalar_lea.vmem %s1040_s26, 256  ;;  %p1251_p1 = scmp.lt.s32.totalorder %s1040_s26, %s1040_s26 }
 0x7e2   :  { %p1247_p0 = scmp.ne.s32.totalorder %s1040_s26, %s1246_s28  ;;  %p1252_p2 = scmp.lt.s32.totalorder %s1246_s28, %s1246_s28 }
 0x7e4   :  { %p1253_p3 = por %p1252_p2, %p1251_p1 }
 0x7e6   :  { %p1254_p4 = pnand %p1253_p3, %p1247_p0 }
 0x816   :  { %v904_v33 = vpop.f32.mrb[24].mxu1 }
 0x817   :  { %v906_v34 = vpop.f32.mrb[25].mxu1  ;;  %v922_v35 = vmul.f32 %v1243_v19, %v904_v33 }
 0x81a   :  { %v909_v30 = vpop.f32.mrb[26].mxu1 }
 0x81b   :  { %v924_v8 = vmul.f32 %v1245_v22, %v909_v30  ;;  %v911_v36 = vpop.f32.mrb[27].mxu1 }
 0x81d   :  { %v925_v48 = vpack.c.bf16 %v924_v8, %v922_v35 }
 0x81f   :  { %1178 = vmatmul.mubr.msk.bf16.vlgmr.msra.gmra.mrb[12].mxu0 %vm300_vm1, %v925_v48 }
 0x8f2   :  { %v970_v50 = vpop.f32.mrb[12].mxu0 }
 0x8f3   :  { %v971_v51 = vadd.f32 %v970_v50, %v931_v49  ;;  %v1179_v52 = vpop.f32.mrb[13].mxu0 }
 0x8f4   :  { %v973_v53 = vpop.f32.mrb[14].mxu0 }
 0x8f5   :  { %v974_v54 = vadd.f32 %v973_v53, %v931_v49  ;;  %v1180_v40 = vpop.f32.mrb[15].mxu0  ;;  %v977_v38 = vmax.f32 %v971_v51, 0.0 }
 0x8f7   :  { %v978_v56 = vmax.f32 %v974_v54, 0.0 }
 0x8f9   :  { %v979_v58 = vpack.c.bf16 %v978_v56, %v977_v38 }
 0x8fb   :  { %1186 = vmatmul.mubr.msk.bf16.vlgmr.msra.gmra.mrb[28].mxu1 %vm179_vm0, %v979_v58 }
 0x8fc   :  { %1257 = shalt.err (!%p1254_p4)
}
 0x8fd   :  { %s1258_s7 = scalar_lea.hbm %s1908_s21, 256 }
 0x8fe   :  { %p1259_p5 = scmp.ne.s32.totalorder %s1908_s21, %s1258_s7  ;;  %p1262_p6 = scmp.lt.u32.totalorder %s1258_s7, %s1908_s21 }
 0x900   :  { %p1264_p7 = pnand %p1262_p6, %p1259_p5 }
 0x902   :  { %1267 = shalt.err (!%p1264_p7)
}
 0x903   :  { %s1298_s4 = smov 128   ;;  %s1299_s27 = smov 8   ;;  %v986_v41 = vrot.slane %v178_v12, %v1527_v44 }
 0x904   :  { %1045 = dma.vmem_to_hbm [thread:$0]  %s1040_s26, 256, %s1908_s21, [#allocation4], %s1298_s4, %s1298_s4, %s1299_s27  }
 0x905   :  { %s1300_s18 = smov [#allocation5]  }
 0x906   :  { %s1051_s19 = sshll.u32 %s1300_s18, 4  ;;  %s1052_s19 = int_to_ptr.vmem [resolvable:$true] %s1051_s19 }
 0x907   :  { %s1268_s20 = scalar_lea.vmem %s1052_s19, 256  ;;  %p1273_p9 = scmp.lt.s32.totalorder %s1052_s19, %s1052_s19 }
 0x908   :  { %p1269_p8 = scmp.ne.s32.totalorder %s1052_s19, %s1268_s20  ;;  %p1274_p10 = scmp.lt.s32.totalorder %s1268_s20, %s1268_s20 }
 0x90a   :  { %p1275_p11 = por %p1274_p10, %p1273_p9 }
 0x90c   :  { %p1276_p12 = pnand %p1275_p11, %p1269_p8 }
 0x9ce   :  { %v1025_v45 = vpop.f32.mrb[28].mxu1 }
 0x9cf   :  { %v1026_v46 = vadd.f32 %v1025_v45, %v986_v41  ;;  %v1187_v47 = vpop.f32.mrb[29].mxu1 }
 0x9d0   :  { %v1028_v59 = vpop.f32.mrb[30].mxu1 }
 0x9d1   :  { %1032 = vst [vmem:[#allocation5] sm:$0xff] %v1026_v46  ;;  %v1029_v60 = vadd.f32 %v1028_v59, %v986_v41  ;;  %v1188_v61 = vpop.f32.mrb[31].mxu1 }
 0x9d3   :  { %1033 = vst [vmem:[#allocation5 + $0x8] sm:$0xff] %v1029_v60 }
 0x9d4   :  { %1279 = shalt.err (!%p1276_p12)
}
 0x9d5   :  { %s1280_s9 = scalar_lea.hbm %s1909_s22, 256 }
 0x9d6   :  { %p1281_p13 = scmp.ne.s32.totalorder %s1909_s22, %s1280_s9  ;;  %p1284_p0 = scmp.lt.u32.totalorder %s1280_s9, %s1909_s22 }
 0x9d8   :  { %p1286_p1 = pnand %p1284_p0, %p1281_p13 }
 0x9da   :  { %1289 = shalt.err (!%p1286_p1)
}
 0x9db   :  { %1057 = dma.vmem_to_hbm [thread:$0]  %s1052_s19, 256, %s1909_s22, [#allocation6], %s1298_s4, %s1298_s4, %s1299_s27  }
 0x9dc   :  { %1290 = dma.done.wait [#allocation4], 256  }
 0x9dd   :  { %1291 = vsyncadd [#allocation4], 4294967040 }
 0x9de   :  { %1292 = dma.done.wait [#allocation6], 256  }
 0x9df   :  { %1293 = vsyncadd [#allocation6], 4294967040 }
 0x9e0   :  { %1088 = vsyncpa [#allocation4], 1 }
 0x9e1   :  { %1089 = vsyncpa [#allocation6], 1 }

</bundles_post_ra>
